<compile_context>
chip_gen: v7x
topology: tpu7x:2x2x1
jax: 0.10.0
libtpu: 0.0.40
codegen_flags: <defaults>
</compile_context>

<pallas_src>
import jax
import jax.numpy as jnp
from jax.experimental import pallas as pl
from jax.experimental.pallas import tpu as pltpu

_LANE_CANDIDATES = (4096, 2048, 1024, 512, 256, 128)
_TARGET_BLOCK_BYTES = 2 * 1024 * 1024  # ~2 MiB per block


def _hardsigmoid_kernel(x_ref, o_ref):
    x = x_ref[...]
    # Python-scalar constants are weakly typed -> no promotion (bf16 stays bf16).
    o_ref[...] = (jnp.clip(x + 3.0, 0.0, 6.0) * (1.0 / 6.0)).astype(o_ref.dtype)


def _sublane_multiple(dtype) -> int:
    return {4: 8, 2: 16, 1: 32}.get(jnp.dtype(dtype).itemsize, 8)


def _round_up(v: int, m: int) -> int:
    return -(-v // m) * m


def hardsigmoid(x: jax.Array) -> jax.Array:
    """Elementwise HardSigmoid over any shape (NCHW etc.)."""
    orig_shape = x.shape
    dtype = x.dtype
    total = x.size
    if total == 0:
        return x
    itemsize = jnp.dtype(dtype).itemsize
    sub = _sublane_multiple(dtype)

    # Widest lane-dense last dim that divides the flat size -> copy-free path.
    lane = None
    for cand in _LANE_CANDIDATES:
        if total % cand == 0:
            lane = cand
            break

    if lane is not None:
        rows = total // lane
        x2d = x.reshape(rows, lane)  # contiguous reshape: no extra HBM pass
        padded = False
    else:
        # Ragged tail (rare): single pad to a 128-lane slab.
        lane = 128
        rows = pl.cdiv(total, lane)
        flat = jnp.pad(jnp.ravel(x), (0, rows * lane - total))
        x2d = flat.reshape(rows, lane)
        padded = True

    # ~2 MiB blocks, second-to-last dim a multiple of the dtype packing.
    max_tile = max(sub, (_TARGET_BLOCK_BYTES // (lane * itemsize)) // sub * sub)
    if rows <= max_tile:
        if rows >= 2 * sub:
            # Split into (at least) 2 blocks so both v7x TensorCores get work.
            tile_rows = _round_up(-(-rows // 2), sub)
        else:
            tile_rows = rows  # whole-array block (full dims are always legal)
    else:
        tile_rows = max_tile
    grid_len = pl.cdiv(rows, tile_rows)

    out2d = pl.pallas_call(
        _hardsigmoid_kernel,
        out_shape=jax.ShapeDtypeStruct((rows, lane), dtype),
        grid_spec=pltpu.PrefetchScalarGridSpec(
            num_scalar_prefetch=0,
            grid=(grid_len,),
            in_specs=[pl.BlockSpec((tile_rows, lane), lambda i: (i, 0))],
            out_specs=pl.BlockSpec((tile_rows, lane), lambda i: (i, 0)),
        ),
        compiler_params=pltpu.CompilerParams(
            dimension_semantics=("parallel",),
        ),
        cost_estimate=pl.CostEstimate(
            flops=3 * total,
            transcendentals=0,
            bytes_accessed=2 * total * itemsize,
        ),
    )(x2d)

    if padded:
        return out2d.reshape(-1)[:total].reshape(orig_shape)
    return out2d.reshape(orig_shape)


def _ref(x):
    return jnp.clip(x + 3.0, 0.0, 6.0) * (1.0 / 6.0)


if __name__ == "__main__":
    key = jax.random.PRNGKey(0)
    fwd = jax.jit(hardsigmoid)

    # 1) NCHW f32 (matches the PyTorch module's typical input) — copy-free path.
    x = jax.random.normal(key, (2, 4, 16, 16), dtype=jnp.float32) * 4.0
    out = jax.block_until_ready(fwd(x))
    assert out.shape == x.shape and out.dtype == x.dtype
    assert jnp.allclose(out, _ref(x), atol=1e-6), "f32 mismatch vs reference"

    # 2) Ragged size (not a multiple of 128) — exercises the padded fallback.
    xr = jax.random.normal(jax.random.PRNGKey(1), (3, 5, 7), dtype=jnp.float32) * 4.0
    outr = jax.block_until_ready(fwd(xr))
    assert outr.shape == xr.shape
    assert jnp.allclose(outr, _ref(xr), atol=1e-6), "ragged mismatch vs reference"

    # 3) bf16 — compute stays in bf16 inside the kernel.
    xb = (jax.random.normal(jax.random.PRNGKey(2), (2, 4, 16, 16)) * 4.0).astype(jnp.bfloat16)
    outb = jax.block_until_ready(fwd(xb))
    assert outb.dtype == jnp.bfloat16
    assert jnp.allclose(outb.astype(jnp.float32), _ref(xb).astype(jnp.float32), atol=1e-2), \
        "bf16 mismatch vs reference"

    print("KERNEL_OK")
</pallas_src>

<mosaic_0001>
module attributes {stable_mosaic.version = 11 : i64} {
  func.func @_hardsigmoid_kernel(%arg0: i32, %arg1: memref<1x2048xf32, #tpu.memory_space<vmem>>, %arg2: memref<1x2048xf32, #tpu.memory_space<vmem>>) attributes {dimension_semantics = [#tpu.dimension_semantics<parallel>], iteration_bounds = array<i64: 1>, scalar_prefetch = 0 : i64, scratch_operands = 0 : i64, tpu.core_type = #tpu.core_type<tc>, window_params = [{transform_indices = @transform_0, window_bounds = array<i64: 1, 2048>}, {transform_indices = @transform_1, window_bounds = array<i64: 1, 2048>}]} {
    %c0 = arith.constant 0 : index
    %c0_0 = arith.constant 0 : index
    %0 = vector.load %arg1[%c0, %c0_0] : memref<1x2048xf32, #tpu.memory_space<vmem>>, vector<1x2048xf32>
    %cst = arith.constant 3.000000e+00 : f32
    %1 = vector.broadcast %cst : f32 to vector<1x2048xf32>
    %2 = arith.addf %0, %1 : vector<1x2048xf32>
    %cst_1 = arith.constant 0.000000e+00 : f32
    %cst_2 = arith.constant 6.000000e+00 : f32
    %3 = vector.broadcast %cst_1 : f32 to vector<1x2048xf32>
    %4 = arith.maximumf %3, %2 : vector<1x2048xf32>
    %5 = vector.broadcast %cst_2 : f32 to vector<1x2048xf32>
    %6 = arith.minimumf %5, %4 : vector<1x2048xf32>
    %cst_3 = arith.constant 0.166666672 : f32
    %7 = vector.broadcast %cst_3 : f32 to vector<1x2048xf32>
    %8 = arith.mulf %6, %7 : vector<1x2048xf32>
    %c0_4 = arith.constant 0 : index
    %c0_5 = arith.constant 0 : index
    %9 = vector.load %arg2[%c0_4, %c0_5] : memref<1x2048xf32, #tpu.memory_space<vmem>>, vector<1x2048xf32>
    tpu.vector_store %arg2[%c0_4, %c0_5], %8 {strides = array<i32>} : memref<1x2048xf32, #tpu.memory_space<vmem>>, vector<1x2048xf32>,
    return
  }
  func.func @transform_0(%arg0: i32) -> (i32, i32) {
    %c0_i32 = arith.constant 0 : i32
    %c0_i32_0 = arith.constant 0 : i32
    return %arg0, %c0_i32 : i32, i32
  }
  func.func @transform_1(%arg0: i32) -> (i32, i32) {
    %c0_i32 = arith.constant 0 : i32
    %c0_i32_0 = arith.constant 0 : i32
    return %arg0, %c0_i32 : i32, i32
  }
}

</mosaic_0001>

<bundles_post_ra>
// kernel: hardsigmoid.1
= control target key start
LH: loop header
LB: loop body
LE: loop exit
PB: predicated region body
PF: predicated region fallthrough
CT: control target
= control target key end

     0   :  { %s46_s0 = inlined_call_operand.vmem [shape: f32[1,2048], index: 0, kind: input, shape index: {}]   ;;  %s47_s1 = inlined_call_operand.vmem [shape: f32[1,2048], index: 1, kind: output, shape index: {}]  }
   0x1   :  { %v8_v0 = vld [vmem:[%s46_s0] sm:$0xff]  ;;  %v9_v1 = vld [vmem:[%s46_s0 + $0x8] sm:$0xff] }
   0x2   :  { %v10_v2 = vadd.f32 3.0, %v8_v0  ;;  %v11_v3 = vadd.f32 3.0, %v9_v1 }
   0x4   :  { %v12_v4 = vmax.f32 %v10_v2, 0.0  ;;  %v13_v5 = vmax.f32 %v11_v3, 0.0 }
   0x6   :  { %v14_v6 = vmin.f32 %v12_v4, 6.0  ;;  %v15_v7 = vmin.f32 %v13_v5, 6.0 }
   0x8   :  { %v16_v8 = vmul.f32 0.16666667, %v14_v6  ;;  %v17_v9 = vmul.f32 0.16666667, %v15_v7 }
   0xa   :  { %18 = vst [vmem:[%s47_s1] sm:$0xff] %v16_v8  ;;  %19 = vst [vmem:[%s47_s1 + $0x8] sm:$0xff] %v17_v9 }

</bundles_post_ra>
